<compile_context>
chip_gen: v5e
topology: v5e:2x2
jax: 0.10.0
libtpu: 0.0.40
codegen_flags: <defaults>
</compile_context>

<pallas_src>
from typing import Dict, List, Union
import math

import jax
import jax.numpy as jnp
from jax.experimental import pallas as pl
from jax.experimental.pallas import tpu as pltpu


# ----------------------------------------------------------------------------
# Concept-dimension bookkeeping (mirrors validate_and_generate_concept_names /
# compute_output_size from torch_concepts).
# ----------------------------------------------------------------------------
def validate_and_generate_concept_names(
    out_concept_dimensions: Dict[int, Union[int, List[str]]]
) -> Dict[int, List[str]]:
    concept_names = {}
    for dim, val in out_concept_dimensions.items():
        if isinstance(val, int):
            concept_names[dim] = [f"concept_{dim}_{i}" for i in range(val)]
        elif isinstance(val, list):
            concept_names[dim] = list(val)
        else:
            raise ValueError(f"Invalid concept dimension spec for dim {dim}: {val}")
    return concept_names


def compute_output_size(concept_names: Dict[int, List[str]]) -> int:
    return math.prod(len(v) for v in concept_names.values())


def _round_up(x: int, m: int) -> int:
    return ((x + m - 1) // m) * m


# ----------------------------------------------------------------------------
# Pallas kernel: tiled dense layer  out = x @ w + b
# ----------------------------------------------------------------------------
def _linear_concept_kernel(x_ref, w_ref, b_ref, o_ref, acc_ref):
    # x_ref: (tm, tk), w_ref: (tk, tn), b_ref: (1, tn) f32,
    # o_ref: (tm, tn), acc_ref: (tm, tn) f32 scratch (persists across K axis).
    k = pl.program_id(2)

    @pl.when(k == 0)
    def _init():
        # Fold the bias into the accumulator (no separate epilogue add).
        acc_ref[...] = jnp.broadcast_to(
            b_ref[...].astype(jnp.float32), acc_ref.shape
        )

    acc_ref[...] += jnp.dot(
        x_ref[...], w_ref[...], preferred_element_type=jnp.float32
    )

    @pl.when(k == pl.num_programs(2) - 1)
    def _finalize():
        o_ref[...] = acc_ref[...].astype(o_ref.dtype)


def linear_concept_forward(
    x,
    w_t,
    b2d,
    *,
    out_features: int = None,
    compute_dtype=None,
    tm_max: int = 256,
    tn_max: int = 512,
    tk_max: int = 512,
):
    """Fused dense forward: (x @ w_t + b)[:, :out_features].

    x:    (B, H)
    w_t:  (H, O_in)  weight already transposed (lane-dense output axis);
          may already be zero-padded on the output axis.
    b2d:  (1, O_in)  bias (float32), padded consistently with w_t.
    out_features: logical number of output columns to return (<= O_in).
    compute_dtype: optional dtype (e.g. jnp.bfloat16) for x / w_t streaming;
          accumulation is always float32, output is float32.
    """
    B, H = x.shape
    Hw, O_in = w_t.shape
    assert Hw == H, (Hw, H)
    if out_features is None:
        out_features = O_in
    assert out_features <= O_in

    if compute_dtype is not None:
        x = x.astype(compute_dtype)
        w_t = w_t.astype(compute_dtype)
    b2d = b2d.astype(jnp.float32)

    # ---- tile sizes (sublane/lane aligned, sized for the 64 MiB v7x VMEM) ----
    tm = min(_round_up(B, 8), tm_max)
    tk = H if H <= tk_max else tk_max          # tk_max is a multiple of 128
    tn = min(_round_up(O_in, 128), tn_max)

    Bp = _round_up(B, tm)
    Hp = _round_up(H, tk)
    Op = _round_up(O_in, tn)

    # Zero-pad to tile multiples (padding contributes zeros to the matmul and
    # is sliced off below -> no effect on results).
    if (Bp, Hp) != (B, H):
        x = jnp.pad(x, ((0, Bp - B), (0, Hp - H)))
    if (Hp, Op) != (H, O_in):
        w_t = jnp.pad(w_t, ((0, Hp - H), (0, Op - O_in)))
    if Op != O_in:
        b2d = jnp.pad(b2d, ((0, 0), (0, Op - O_in)))

    grid = (Bp // tm, Op // tn, Hp // tk)      # reduction (K) axis last

    itemsize = jnp.dtype(x.dtype).itemsize
    cost = pl.CostEstimate(
        flops=2 * Bp * Hp * Op,
        transcendentals=0,
        bytes_accessed=itemsize * (Bp * Hp + Hp * Op) + 4 * (Op + Bp * Op),
    )

    # VMEM budget: 2x double-buffered input tiles + output tile + accumulator,
    # with slack; capped well below v7x's 64 MiB physical VMEM (v5e/v6e have
    # 128 MiB so this is safe everywhere).
    tile_bytes = itemsize * 2 * (tm * tk + tk * tn + tn) + 4 * 3 * (tm * tn)
    vmem_limit = int(min(max(2 * tile_bytes, 32 << 20), 48 << 20))

    out = pl.pallas_call(
        _linear_concept_kernel,
        out_shape=jax.ShapeDtypeStruct((Bp, Op), jnp.float32),
        grid_spec=pltpu.PrefetchScalarGridSpec(
            num_scalar_prefetch=0,
            grid=grid,
            in_specs=[
                pl.BlockSpec((tm, tk), lambda i, j, k: (i, k)),
                pl.BlockSpec((tk, tn), lambda i, j, k: (k, j)),
                pl.BlockSpec((1, tn), lambda i, j, k: (0, j)),
            ],
            out_specs=pl.BlockSpec((tm, tn), lambda i, j, k: (i, j)),
            scratch_shapes=[pltpu.VMEM((tm, tn), jnp.float32)],
        ),
        compiler_params=pltpu.CompilerParams(
            dimension_semantics=("parallel", "parallel", "arbitrary"),
            vmem_limit_bytes=vmem_limit,
        ),
        cost_estimate=cost,
    )(x, w_t, b2d)

    # Slice off padding (lane/sublane padding is layout plumbing only).
    return out[:B, :out_features]


# ----------------------------------------------------------------------------
# Concept layer wrapper (mirrors BaseConceptLayer + a linear forward).
# ----------------------------------------------------------------------------
class LinearConceptLayerJAX:
    def __init__(
        self,
        in_features: int,
        out_concept_dimensions: Dict[int, Union[int, List[str]]],
        key: jax.Array,
        *,
        compute_dtype=None,
    ):
        self.concept_names = validate_and_generate_concept_names(
            out_concept_dimensions
        )
        self.output_size = compute_output_size(self.concept_names)
        self.concept_shape = tuple(
            len(self.concept_names[d]) for d in sorted(self.concept_names.keys())
        )
        self.in_features = in_features
        self.compute_dtype = compute_dtype

        kw, kb = jax.random.split(key)
        # nn.Linear-style init (uniform in [-1/sqrt(fan_in), 1/sqrt(fan_in)]).
        bound = 1.0 / math.sqrt(in_features)
        # Stored transposed: (in_features, output_size) -> lane-dense output.
        self.w_t = jax.random.uniform(
            kw, (in_features, self.output_size), jnp.float32, -bound, bound
        )
        self.b = jax.random.uniform(
            kb, (self.output_size,), jnp.float32, -bound, bound
        )

        # Pad params once at init to a lane-dense (multiple-of-128) output
        # width; padded columns are zero so they never leak into real outputs.
        o_pad = _round_up(max(self.output_size, 1), 128)
        self.w_t_padded = jnp.pad(
            self.w_t, ((0, 0), (0, o_pad - self.output_size))
        )
        self.b2d_padded = jnp.pad(
            self.b, (0, o_pad - self.output_size)
        ).reshape(1, o_pad)

    def __call__(self, x):
        # x: (batch, in_features) -> (batch, *concept_dims)
        flat = linear_concept_forward(
            x,
            self.w_t_padded,
            self.b2d_padded,
            out_features=self.output_size,
            compute_dtype=self.compute_dtype,
        )
        return flat.reshape((x.shape[0],) + self.concept_shape)


if __name__ == "__main__":
    key = jax.random.PRNGKey(0)
    k_x1, k_p1, k_x2, k_p2 = jax.random.split(key, 4)

    # --- Test 1: docstring example shapes (batch=2, hidden=32, concepts 2x3) ---
    batch, hidden = 2, 32
    out_concept_dimensions = {1: ["concept_a", "concept_b"], 2: 3}

    layer = LinearConceptLayerJAX(hidden, out_concept_dimensions, k_p1)
    x = jax.random.normal(k_x1, (batch, hidden), jnp.float32)

    out = layer(x)
    out = jax.block_until_ready(out)

    ref = (x @ layer.w_t + layer.b).reshape(out.shape)
    assert out.shape == (batch, 2, 3), out.shape
    assert jnp.allclose(out, ref, atol=1e-5, rtol=1e-5)

    # --- Test 2: exercises the multi-step K (accumulator) path (grid K = 2) ---
    batch2, hidden2 = 8, 1024
    layer2 = LinearConceptLayerJAX(hidden2, {1: 2, 2: 3}, k_p2)
    x2 = jax.random.normal(k_x2, (batch2, hidden2), jnp.float32)

    out2 = jax.block_until_ready(layer2(x2))
    ref2 = (x2 @ layer2.w_t + layer2.b).reshape(out2.shape)
    assert out2.shape == (batch2, 2, 3), out2.shape
    assert jnp.allclose(out2, ref2, atol=1e-4, rtol=1e-4)

    print("KERNEL_OK")
</pallas_src>

<mosaic_0001>
module attributes {stable_mosaic.version = 11 : i64} {
  func.func @_linear_concept_kernel(%arg0: i32, %arg1: i32, %arg2: i32, %arg3: memref<8x32xf32, #tpu.memory_space<vmem>>, %arg4: memref<32x128xf32, #tpu.memory_space<vmem>>, %arg5: memref<1x128xf32, #tpu.memory_space<vmem>>, %arg6: memref<8x128xf32, #tpu.memory_space<vmem>>, %arg7: memref<8x128xf32, #tpu.memory_space<vmem>>) attributes {dimension_semantics = [#tpu.dimension_semantics<parallel>, #tpu.dimension_semantics<parallel>, #tpu.dimension_semantics<arbitrary>], iteration_bounds = array<i64: 1, 1, 1>, scalar_prefetch = 0 : i64, scratch_operands = 1 : i64, tpu.core_type = #tpu.core_type<tc>, window_params = [{transform_indices = @transform_0, window_bounds = array<i64: 8, 32>}, {transform_indices = @transform_1, window_bounds = array<i64: 32, 128>}, {transform_indices = @transform_2, window_bounds = array<i64: 1, 128>}, {transform_indices = @transform_3, window_bounds = array<i64: 8, 128>}]} {
    %c0_i32 = arith.constant 0 : i32
    %0 = arith.cmpi eq, %arg2, %c0_i32 : i32
    %1 = arith.extui %0 : i1 to i32
    %c0_i32_0 = arith.constant 0 : i32
    %2 = arith.cmpi ne, %1, %c0_i32_0 : i32
    scf.if %2 {
      %c0_10 = arith.constant 0 : index
      %c0_11 = arith.constant 0 : index
      %12 = vector.load %arg5[%c0_10, %c0_11] : memref<1x128xf32, #tpu.memory_space<vmem>>, vector<1x128xf32>
      %13 = vector.shape_cast %12 : vector<1x128xf32> to vector<1x128xf32>
      %14 = vector.broadcast %13 : vector<1x128xf32> to vector<8x128xf32>
      %c0_12 = arith.constant 0 : index
      %c0_13 = arith.constant 0 : index
      %15 = vector.load %arg7[%c0_12, %c0_13] : memref<8x128xf32, #tpu.memory_space<vmem>>, vector<8x128xf32>
      tpu.vector_store %arg7[%c0_12, %c0_13], %14 {strides = array<i32>} : memref<8x128xf32, #tpu.memory_space<vmem>>, vector<8x128xf32>,
    } else {
    }
    %c0 = arith.constant 0 : index
    %c0_1 = arith.constant 0 : index
    %3 = vector.load %arg7[%c0, %c0_1] : memref<8x128xf32, #tpu.memory_space<vmem>>, vector<8x128xf32>
    %c0_2 = arith.constant 0 : index
    %c0_3 = arith.constant 0 : index
    %4 = vector.load %arg3[%c0_2, %c0_3] : memref<8x32xf32, #tpu.memory_space<vmem>>, vector<8x32xf32>
    %c0_4 = arith.constant 0 : index
    %c0_5 = arith.constant 0 : index
    %5 = vector.load %arg4[%c0_4, %c0_5] : memref<32x128xf32, #tpu.memory_space<vmem>>, vector<32x128xf32>
    %cst = arith.constant dense<0.000000e+00> : vector<8x128xf32>
    %6 = tpu.matmul %4, %5, %cst {dimension_numbers = #tpu.dot_dimension_numbers<[1], [0], [0], [1], [0, 0, 1, 1], [], []>} : vector<8x32xf32>, vector<32x128xf32>, vector<8x128xf32> -> vector<8x128xf32>
    %7 = arith.addf %3, %6 : vector<8x128xf32>
    %c0_6 = arith.constant 0 : index
    %c0_7 = arith.constant 0 : index
    %8 = vector.load %arg7[%c0_6, %c0_7] : memref<8x128xf32, #tpu.memory_space<vmem>>, vector<8x128xf32>
    tpu.vector_store %arg7[%c0_6, %c0_7], %7 {strides = array<i32>} : memref<8x128xf32, #tpu.memory_space<vmem>>, vector<8x128xf32>,
    %c0_i32_8 = arith.constant 0 : i32
    %9 = arith.cmpi eq, %arg2, %c0_i32_8 : i32
    %10 = arith.extui %9 : i1 to i32
    %c0_i32_9 = arith.constant 0 : i32
    %11 = arith.cmpi ne, %10, %c0_i32_9 : i32
    scf.if %11 {
      %c0_10 = arith.constant 0 : index
      %c0_11 = arith.constant 0 : index
      %12 = vector.load %arg7[%c0_10, %c0_11] : memref<8x128xf32, #tpu.memory_space<vmem>>, vector<8x128xf32>
      %c0_12 = arith.constant 0 : index
      %c0_13 = arith.constant 0 : index
      %13 = vector.load %arg6[%c0_12, %c0_13] : memref<8x128xf32, #tpu.memory_space<vmem>>, vector<8x128xf32>
      tpu.vector_store %arg6[%c0_12, %c0_13], %12 {strides = array<i32>} : memref<8x128xf32, #tpu.memory_space<vmem>>, vector<8x128xf32>,
    } else {
    }
    return
  }
  func.func @transform_0(%arg0: i32, %arg1: i32, %arg2: i32) -> (i32, i32) {
    %c0_i32 = arith.constant 0 : i32
    return %arg0, %arg2 : i32, i32
  }
  func.func @transform_1(%arg0: i32, %arg1: i32, %arg2: i32) -> (i32, i32) {
    %c0_i32 = arith.constant 0 : i32
    return %arg2, %arg1 : i32, i32
  }
  func.func @transform_2(%arg0: i32, %arg1: i32, %arg2: i32) -> (i32, i32) {
    %c0_i32 = arith.constant 0 : i32
    %c0_i32_0 = arith.constant 0 : i32
    return %c0_i32, %arg1 : i32, i32
  }
  func.func @transform_3(%arg0: i32, %arg1: i32, %arg2: i32) -> (i32, i32) {
    %c0_i32 = arith.constant 0 : i32
    return %arg0, %arg1 : i32, i32
  }
}

</mosaic_0001>

<bundles_post_ra>
// kernel: tpu_custom_call.1
= control target key start
LH: loop header
LB: loop body
LE: loop exit
PB: predicated region body
PF: predicated region fallthrough
CT: control target
= control target key end

     0   :  { %8 = vsyncpa [#allocation4], 0  ;;  %s231_s0 = inlined_call_operand.hbm [shape: f32[8,32], index: 0, kind: input, shape index: {}]   ;;  %s232_s1 = inlined_call_operand.hbm [shape: f32[32,128], index: 1, kind: input, shape index: {}]   ;;  %s233_s2 = inlined_call_operand.vmem [shape: f32[1,128], index: 2, kind: input, shape index: {}]   ;;  %s234_s3 = inlined_call_operand.hbm [shape: f32[8,128], index: 3, kind: output, shape index: {}]  }
   0x1   :  { %9 = vsyncpa [#allocation7], 0 }
   0x2   :  { %10 = vsyncpa [#allocation5], 0  ;;  %s16_s14 = sshll.u32 %s231_s0, 4  ;;  %s194_s15 = smov [#allocation3]   ;;  %s17_s14 = int_to_ptr.hbm [resolvable:$true] %s16_s14 }
   0x3   :  { %s18_s16 = sshll.u32 %s194_s15, 4  ;;  %s26_s19 = sshll.u32 %s232_s1, 4  ;;  %s19_s16 = int_to_ptr.vmem [resolvable:$true] %s18_s16  ;;  %s27_s19 = int_to_ptr.hbm [resolvable:$true] %s26_s19 }
   0x4   :  { %21 = dma.hbm_to_vmem [thread:$0]  %s17_s14, 128, %s19_s16, [#allocation4]  }
   0x5   :  { %s195_s20 = smov [#allocation6]   ;;  %s196_s22 = smov 128  }
   0x6   :  { %s28_s21 = sshll.u32 %s195_s20, 4  ;;  %s197_s23 = smov 8   ;;  %s29_s21 = int_to_ptr.vmem [resolvable:$true] %s28_s21 }
   0x7   :  { %34 = dma.hbm_to_vmem [thread:$0]  %s27_s19, 512, %s29_s21, [#allocation7], %s196_s22, %s196_s22, %s197_s23  }
   0x8   :  { %188 = dma.done.wait [#allocation4], 128  }
   0x9   :  { %189 = vsyncadd [#allocation4], 4294967168 }
   0xa   :  { %190 = dma.done.wait [#allocation7], 512  }
   0xb   :  { %191 = vsyncadd [#allocation7], 4294966784  ;;  %v59_v0 = vld [vmem:[#allocation6 + $0x18] sm:$0xff]  ;;  %v58_v1 = vld [vmem:[#allocation6 + $0x10] sm:$0xff]  ;;  %vm60_vm0 = vcmask 261120   ;;  %s198_s24 = smov [#allocation8]  }
   0xc   :  { %76 = vmatpush.msra.mxu0 %v59_v0  ;;  %v57_v2 = vld [vmem:[#allocation6 + $0x8] sm:$0xff]  ;;  %v56_v3 = vld [vmem:[#allocation6] sm:$0xff]  ;;  %v55_v4 = vld [vmem:[#allocation3] sm:$0xff]  ;;  %s96_s25 = sshll.u32 %s198_s24, 4  ;;  %s98_s28 = sshll.u32 %s234_s3, 4  ;;  %s97_s25 = int_to_ptr.vmem [resolvable:$true] %s96_s25  ;;  %s99_s28 = int_to_ptr.hbm [resolvable:$true] %s98_s28 }
   0xd   :  { %v115_v5 = vld [vmem:[%s233_s2] ss:$0 sm:$0xff] }
   0xe   :  { %77 = vmatpush.msra.mxu0 %v58_v1 }
  0x10   :  { %78 = vmatpush.msra.mxu0 %v57_v2 }
  0x12   :  { %79 = vmatpush.msra.mxu0 %v56_v3 }
  0x13   :  { %109 = vmatmul.msk.f32.vlgmr.msra.gmra.mxu0 %vm60_vm0, %v55_v4 }
  0x90   :  { %v81_v6 = vpop.f32.mrf.mxu0 }
  0x91   :  { %v84_v7 = vadd.f32 %v115_v5, %v81_v6 }
  0x93   :  { %90 = vst [vmem:[#allocation8] sm:$0xff] %v84_v7 }
  0x94   :  { %101 = dma.vmem_to_hbm [thread:$0]  %s97_s25, 128, %s99_s28, [#allocation5]  }
  0x95   :  { %192 = dma.done.wait [#allocation5], 128  }
  0x96   :  { %193 = vsyncadd [#allocation5], 4294967168 }
  0x97   :  { %106 = vsyncpa [#allocation4], 1 }
  0x98   :  { %107 = vsyncpa [#allocation7], 1 }
  0x99   :  { %108 = vsyncpa [#allocation5], 1 }

</bundles_post_ra>
